<compile_context>
chip_gen: v5e
topology: v5e:2x2
jax: 0.10.0
libtpu: 0.0.40
codegen_flags: <defaults>
</compile_context>

<pallas_src>
import functools
import math
from types import SimpleNamespace

import jax
import jax.numpy as jnp
from jax.experimental import pallas as pl
from jax.experimental.pallas import tpu as pltpu


# ----------------------------------------------------------------------------
# Kernel 1: hoisted time-parallel input projection  (rows = T*B)
# ----------------------------------------------------------------------------
def _input_proj_kernel(x_ref, w_ref, b_ref, out_ref):
    # x_ref: (rt, D)  w_ref: (D, 4H)  b_ref: (1, 4H)  out_ref: (rt, 4H) f32
    out_ref[...] = (
        jnp.dot(x_ref[...], w_ref[...], preferred_element_type=jnp.float32)
        + b_ref[...]
    )


def input_projection_pallas(x, w_ih, bias, matmul_dtype):
    """pre_gates[t, b, :] = x[t, b, :] @ W_ih^T + bias, for the whole sequence."""
    T, B, D = x.shape
    H4 = w_ih.shape[0]
    rows = T * B

    x2 = x.reshape(rows, D).astype(matmul_dtype)
    w_t = jnp.asarray(w_ih, matmul_dtype).T            # (D, 4H)
    b = jnp.asarray(bias, jnp.float32).reshape(1, H4)  # (1, 4H)

    # Row tile sized toward the 256-wide MXU (v6e/v7x); small inputs use one tile.
    rt = min(256, rows)
    rows_pad = -(-rows // rt) * rt
    if rows_pad != rows:
        x2 = jnp.pad(x2, ((0, rows_pad - rows), (0, 0)))

    out = pl.pallas_call(
        _input_proj_kernel,
        out_shape=jax.ShapeDtypeStruct((rows_pad, H4), jnp.float32),
        grid_spec=pltpu.PrefetchScalarGridSpec(
            num_scalar_prefetch=0,
            grid=(rows_pad // rt,),
            in_specs=[
                pl.BlockSpec((rt, D), lambda i: (i, 0)),
                pl.BlockSpec((D, H4), lambda i: (0, 0)),   # constant weight block
                pl.BlockSpec((1, H4), lambda i: (0, 0)),   # constant bias block
            ],
            out_specs=pl.BlockSpec((rt, H4), lambda i: (i, 0)),
        ),
        compiler_params=pltpu.CompilerParams(
            dimension_semantics=("parallel",)),
    )(x2, w_t, b)

    return out[:rows].reshape(T, B, H4)


# ----------------------------------------------------------------------------
# Kernel 2: sequential recurrence over chunked time axis
# ----------------------------------------------------------------------------
def _lstm_recurrent_kernel(pre_ref, whh_ref, out_ref, h_scratch, c_scratch,
                           *, tc, hidden):
    """One chunk of Tc timesteps of the LSTM recurrence.

    pre_ref:   (Tc, B, 4H) f32   precomputed x@W_ih^T + b for this chunk
    whh_ref:   (H, 4H)           hidden->gates weight (pre-transposed)
    out_ref:   (Tc, B, H)  f32   hidden-state outputs for this chunk
    h_scratch, c_scratch: (B, H) f32 state, persists across grid steps
    """
    chunk = pl.program_id(0)

    @pl.when(chunk == 0)
    def _():
        h_scratch[...] = jnp.zeros_like(h_scratch)
        c_scratch[...] = jnp.zeros_like(c_scratch)

    whh = whh_ref[...]  # (H, 4H), bf16 or f32

    def step(s, carry):
        h, c = carry  # (B, H) f32
        gates = pre_ref[s] + jnp.dot(
            h.astype(whh.dtype), whh, preferred_element_type=jnp.float32)

        i_g = jax.nn.sigmoid(gates[:, 0 * hidden:1 * hidden])
        f_g = jax.nn.sigmoid(gates[:, 1 * hidden:2 * hidden])
        g_g = jnp.tanh(gates[:, 2 * hidden:3 * hidden])
        o_g = jax.nn.sigmoid(gates[:, 3 * hidden:4 * hidden])

        c_new = f_g * c + i_g * g_g
        h_new = o_g * jnp.tanh(c_new)
        out_ref[s] = h_new.astype(out_ref.dtype)
        return h_new, c_new

    # Short fixed trip count -> unroll for LLO scheduler visibility.
    h, c = jax.lax.fori_loop(0, tc, step,
                             (h_scratch[...], c_scratch[...]),
                             unroll=True)
    h_scratch[...] = h
    c_scratch[...] = c


def lstm_layer_pallas(x, w_ih, w_hh, b_ih, b_hh, *,
                      time_chunk=16, matmul_dtype=jnp.bfloat16):
    """Single-direction single-layer LSTM over the whole sequence.

    x:    (T, B, D) float32
    w_ih: (4H, D), w_hh: (4H, H), b_ih/b_hh: (4H,)   (PyTorch parameter layout)
    returns outputs (T, B, H) float32
    """
    T, B, D = x.shape
    H4 = w_ih.shape[0]
    H = H4 // 4

    # 1) Hoisted time-parallel input projection (one big MXU matmul).
    bias = jnp.asarray(b_ih, jnp.float32) + jnp.asarray(b_hh, jnp.float32)
    pre = input_projection_pallas(x.astype(jnp.float32), w_ih, bias,
                                  matmul_dtype)              # (T, B, 4H) f32

    # 2) Sequential recurrence, chunked over time.
    whh_t = jnp.asarray(w_hh, matmul_dtype).T                # (H, 4H)

    tc = min(time_chunk, T)
    T_pad = -(-T // tc) * tc
    if T_pad != T:
        # Padded trailing steps are sliced off; the module only returns
        # `outputs`, so garbage state after step T-1 is irrelevant.
        pre = jnp.pad(pre, ((0, T_pad - T), (0, 0), (0, 0)))

    kernel = functools.partial(_lstm_recurrent_kernel, tc=tc, hidden=H)

    # NOTE: at production sizes use bf16 weights + a conscious vmem_limit_bytes
    # (v7x has 64 MiB VMEM) and single-buffer the constant weight block.
    out = pl.pallas_call(
        kernel,
        out_shape=jax.ShapeDtypeStruct((T_pad, B, H), jnp.float32),
        grid_spec=pltpu.PrefetchScalarGridSpec(
            num_scalar_prefetch=0,
            grid=(T_pad // tc,),
            in_specs=[
                pl.BlockSpec((tc, B, H4), lambda c: (c, 0, 0)),
                pl.BlockSpec((H, H4), lambda c: (0, 0)),     # constant weight
            ],
            out_specs=pl.BlockSpec((tc, B, H), lambda c: (c, 0, 0)),
            scratch_shapes=[
                pltpu.VMEM((B, H), jnp.float32),   # h state
                pltpu.VMEM((B, H), jnp.float32),   # c state
            ],
        ),
        compiler_params=pltpu.CompilerParams(
            dimension_semantics=("arbitrary",)),   # sequential recurrence over T
    )(pre, whh_t)

    return out[:T]


# ----------------------------------------------------------------------------
# Module glue / parameters / reference
# ----------------------------------------------------------------------------
def init_lstm_params(key, input_size, hidden_size, n_layers):
    """PyTorch-style uniform(-1/sqrt(H), 1/sqrt(H)) init, deterministic."""
    params = []
    bound = 1.0 / math.sqrt(hidden_size)
    for layer in range(n_layers):
        d_in = input_size if layer == 0 else hidden_size
        key, k1, k2, k3, k4 = jax.random.split(key, 5)
        params.append(dict(
            w_ih=jax.random.uniform(k1, (4 * hidden_size, d_in),
                                    jnp.float32, -bound, bound),
            w_hh=jax.random.uniform(k2, (4 * hidden_size, hidden_size),
                                    jnp.float32, -bound, bound),
            b_ih=jax.random.uniform(k3, (4 * hidden_size,),
                                    jnp.float32, -bound, bound),
            b_hh=jax.random.uniform(k4, (4 * hidden_size,),
                                    jnp.float32, -bound, bound),
        ))
    return params


def rnn_forward(inputs, params, config, *,
                matmul_dtype=jnp.bfloat16, time_chunk=16):
    """Mirrors RNN.forward: zero-initialized (h0, c0), returns `outputs`.

    inputs: (T, B, input_size)  -> outputs: (T, B, d_hidden)
    """
    # TODO(synk): bidirectional (birnn=True) and inter-layer dropout (dp_ratio>0)
    # are not exercised here; the demo config uses birnn=False, dp_ratio=0.0.
    # TODO(synk): for deep stacks, pipeline layer l+1's input projection
    # against layer l's recurrence instead of one pallas_call per layer.
    x = inputs
    for p in params:
        x = lstm_layer_pallas(x, p["w_ih"], p["w_hh"], p["b_ih"], p["b_hh"],
                              time_chunk=time_chunk, matmul_dtype=matmul_dtype)
    return x


def _lstm_reference(x, params):
    """Pure-JAX f32 reference (lax.scan) for correctness checking."""
    def one_layer(x, p):
        H = p["w_hh"].shape[1]
        B = x.shape[1]

        def step(carry, x_t):
            h, c = carry
            gates = x_t @ p["w_ih"].T + p["b_ih"] + h @ p["w_hh"].T + p["b_hh"]
            i = jax.nn.sigmoid(gates[:, 0 * H:1 * H])
            f = jax.nn.sigmoid(gates[:, 1 * H:2 * H])
            g = jnp.tanh(gates[:, 2 * H:3 * H])
            o = jax.nn.sigmoid(gates[:, 3 * H:4 * H])
            c = f * c + i * g
            h = o * jnp.tanh(c)
            return (h, c), h

        init = (jnp.zeros((B, H), jnp.float32), jnp.zeros((B, H), jnp.float32))
        _, ys = jax.lax.scan(step, init, x)
        return ys

    for p in params:
        x = one_layer(x, p)
    return x


if __name__ == "__main__":
    config = SimpleNamespace(
        d_embed=32, d_proj=32, projection=False,
        d_hidden=32, n_layers=2, dp_ratio=0.0,
        birnn=False, n_cells=2,   # n_cells = n_layers * (2 if birnn else 1)
    )

    T, B = 8, 8
    input_size = config.d_proj if config.projection else config.d_embed

    key = jax.random.PRNGKey(0)
    key, xk, pk = jax.random.split(key, 3)
    inputs = jax.random.normal(xk, (T, B, input_size), jnp.float32)
    params = init_lstm_params(pk, input_size, config.d_hidden, config.n_layers)

    ref = _lstm_reference(inputs, params)

    # f32 matmul path: tight check against the f32 reference.
    out_f32 = rnn_forward(inputs, params, config,
                          matmul_dtype=jnp.float32, time_chunk=16)
    out_f32 = jax.block_until_ready(out_f32)
    assert out_f32.shape == (T, B, config.d_hidden)
    assert jnp.allclose(out_f32, ref, atol=1e-4, rtol=1e-4)

    # bf16 matmul path (MXU-native operands, f32 state/accumulation): looser check.
    out_bf16 = rnn_forward(inputs, params, config,
                           matmul_dtype=jnp.bfloat16, time_chunk=16)
    out_bf16 = jax.block_until_ready(out_bf16)
    assert out_bf16.shape == (T, B, config.d_hidden)
    assert jnp.allclose(out_bf16, ref, atol=5e-2, rtol=5e-2)

    print("KERNEL_OK")
</pallas_src>

<mosaic_0001>
module attributes {stable_mosaic.version = 11 : i64} {
  func.func @_input_proj_kernel(%arg0: i32, %arg1: memref<64x32xf32, #tpu.memory_space<vmem>>, %arg2: memref<32x128xf32, #tpu.memory_space<vmem>>, %arg3: memref<1x128xf32, #tpu.memory_space<vmem>>, %arg4: memref<64x128xf32, #tpu.memory_space<vmem>>) attributes {dimension_semantics = [#tpu.dimension_semantics<parallel>], iteration_bounds = array<i64: 1>, scalar_prefetch = 0 : i64, scratch_operands = 0 : i64, tpu.core_type = #tpu.core_type<tc>, window_params = [{transform_indices = @transform_0, window_bounds = array<i64: 64, 32>}, {pipeline_mode = #tpu.pipeline_mode<synchronous>, transform_indices = @transform_1, window_bounds = array<i64: 32, 128>}, {pipeline_mode = #tpu.pipeline_mode<synchronous>, transform_indices = @transform_2, window_bounds = array<i64: 1, 128>}, {transform_indices = @transform_3, window_bounds = array<i64: 64, 128>}]} {
    %c0 = arith.constant 0 : index
    %c0_0 = arith.constant 0 : index
    %0 = vector.load %arg1[%c0, %c0_0] : memref<64x32xf32, #tpu.memory_space<vmem>>, vector<64x32xf32>
    %c0_1 = arith.constant 0 : index
    %c0_2 = arith.constant 0 : index
    %1 = vector.load %arg2[%c0_1, %c0_2] : memref<32x128xf32, #tpu.memory_space<vmem>>, vector<32x128xf32>
    %cst = arith.constant dense<0.000000e+00> : vector<64x128xf32>
    %2 = tpu.matmul %0, %1, %cst {dimension_numbers = #tpu.dot_dimension_numbers<[1], [0], [0], [1], [0, 0, 1, 1], [], []>} : vector<64x32xf32>, vector<32x128xf32>, vector<64x128xf32> -> vector<64x128xf32>
    %c0_3 = arith.constant 0 : index
    %c0_4 = arith.constant 0 : index
    %3 = vector.load %arg3[%c0_3, %c0_4] : memref<1x128xf32, #tpu.memory_space<vmem>>, vector<1x128xf32>
    %4 = vector.broadcast %3 : vector<1x128xf32> to vector<64x128xf32>
    %5 = arith.addf %2, %4 : vector<64x128xf32>
    %c0_5 = arith.constant 0 : index
    %c0_6 = arith.constant 0 : index
    %6 = vector.load %arg4[%c0_5, %c0_6] : memref<64x128xf32, #tpu.memory_space<vmem>>, vector<64x128xf32>
    tpu.vector_store %arg4[%c0_5, %c0_6], %5 {strides = array<i32>} : memref<64x128xf32, #tpu.memory_space<vmem>>, vector<64x128xf32>,
    return
  }
  func.func @transform_0(%arg0: i32) -> (i32, i32) {
    %c0_i32 = arith.constant 0 : i32
    %c0_i32_0 = arith.constant 0 : i32
    return %arg0, %c0_i32 : i32, i32
  }
  func.func @transform_1(%arg0: i32) -> (i32, i32) {
    %c0_i32 = arith.constant 0 : i32
    %c0_i32_0 = arith.constant 0 : i32
    %c0_i32_1 = arith.constant 0 : i32
    return %c0_i32, %c0_i32_0 : i32, i32
  }
  func.func @transform_2(%arg0: i32) -> (i32, i32) {
    %c0_i32 = arith.constant 0 : i32
    %c0_i32_0 = arith.constant 0 : i32
    %c0_i32_1 = arith.constant 0 : i32
    return %c0_i32, %c0_i32_0 : i32, i32
  }
  func.func @transform_3(%arg0: i32) -> (i32, i32) {
    %c0_i32 = arith.constant 0 : i32
    %c0_i32_0 = arith.constant 0 : i32
    return %arg0, %c0_i32 : i32, i32
  }
}

</mosaic_0001>

<bundles_post_ra>
// kernel: tpu_custom_call.1
= control target key start
LH: loop header
LB: loop body
LE: loop exit
PB: predicated region body
PF: predicated region fallthrough
CT: control target
= control target key end

     0   :  { %s246_s0 = inlined_call_operand.vmem [shape: f32[64,32], index: 0, kind: input, shape index: {}]   ;;  %s247_s1 = inlined_call_operand.vmem [shape: f32[32,128], index: 1, kind: input, shape index: {}]   ;;  %s248_s2 = inlined_call_operand.vmem [shape: f32[1,128], index: 2, kind: input, shape index: {}]   ;;  %s249_s3 = inlined_call_operand.hbm [shape: f32[64,128], index: 3, kind: output, shape index: {}]  }
   0x1   :  { %v26_v0 = vld [vmem:[%s247_s1 + $0x18] sm:$0xff]  ;;  %v25_v1 = vld [vmem:[%s247_s1 + $0x10] sm:$0xff]  ;;  %v24_v2 = vld [vmem:[%s247_s1 + $0x8] sm:$0xff] }
   0x2   :  { %132 = vmatpush.msra.mxu2 %v26_v0  ;;  %133 = vmatpush.msra.mxu3 %v26_v0  ;;  %v23_v3 = vld [vmem:[%s247_s1] sm:$0xff] }
   0x3   :  { %68 = vmatpush.msra.mxu0 %v26_v0  ;;  %131 = vmatpush.msra.mxu1 %v26_v0 }
   0x4   :  { %135 = vmatpush.msra.mxu2 %v25_v1  ;;  %136 = vmatpush.msra.mxu3 %v25_v1 }
   0x5   :  { %69 = vmatpush.msra.mxu0 %v25_v1  ;;  %134 = vmatpush.msra.mxu1 %v25_v1 }
   0x6   :  { %8 = vsyncpa [#allocation3], 0  ;;  %138 = vmatpush.msra.mxu2 %v24_v2  ;;  %139 = vmatpush.msra.mxu3 %v24_v2  ;;  %v19_v4 = vld [vmem:[%s246_s0 + $0x20] sm:$0xff]  ;;  %vm31_vm0 = vcmask 261120   ;;  %v21_v5 = vld [vmem:[%s246_s0 + $0x30] sm:$0xff]  ;;  %s111_s12 = sshll.u32 %s249_s3, 4  ;;  %s112_s12 = int_to_ptr.hbm [resolvable:$true] %s111_s12 }
   0x7   :  { %70 = vmatpush.msra.mxu0 %v24_v2  ;;  %137 = vmatpush.msra.mxu1 %v24_v2  ;;  %v15_v6 = vld [vmem:[%s246_s0] sm:$0xff]  ;;  %v17_v7 = vld [vmem:[%s246_s0 + $0x10] sm:$0xff]  ;;  %v20_v8 = vld [vmem:[%s246_s0 + $0x28] sm:$0xff]  ;;  %s174_s13 = smov 128   ;;  %s175_s14 = smov 8  }
   0x8   :  { %141 = vmatpush.msra.mxu2 %v23_v3  ;;  %142 = vmatpush.msra.mxu3 %v23_v3  ;;  %v22_v9 = vld [vmem:[%s246_s0 + $0x38] sm:$0xff]  ;;  %v16_v10 = vld [vmem:[%s246_s0 + $0x8] sm:$0xff]  ;;  %v146_v12 = vld [vmem:[%s248_s2] ss:$0 sm:$0xff] }
   0x9   :  { %127 = vmatmul.msk.f32.vlgmr.msra.gmra.mxu2 %vm31_vm0, %v19_v4  ;;  %129 = vmatmul.msk.f32.vlgmr.msra.gmra.mxu3 %vm31_vm0, %v21_v5  ;;  %v18_v11 = vld [vmem:[%s246_s0 + $0x18] sm:$0xff]  ;;  %s173_s0 = smov [#allocation2]  }
   0xa   :  { %71 = vmatpush.msra.mxu0 %v23_v3  ;;  %140 = vmatpush.msra.mxu1 %v23_v3  ;;  %s109_s10 = sshll.u32 %s173_s0, 4  ;;  %s110_s10 = int_to_ptr.vmem [resolvable:$true] %s109_s10 }
   0xb   :  { %123 = vmatmul.msk.f32.vlgmr.msra.gmra.mxu0 %vm31_vm0, %v15_v6  ;;  %125 = vmatmul.msk.f32.vlgmr.msra.gmra.mxu1 %vm31_vm0, %v17_v7 }
  0x11   :  { %128 = vmatmul.msk.f32.gmra.mxu2 %vm31_vm0, %v20_v8  ;;  %130 = vmatmul.msk.f32.gmra.mxu3 %vm31_vm0, %v22_v9 }
  0x13   :  { %124 = vmatmul.msk.f32.gmra.mxu0 %vm31_vm0, %v16_v10  ;;  %126 = vmatmul.msk.f32.gmra.mxu1 %vm31_vm0, %v18_v11 }
  0x88   :  { %v73_v13 = vpop.f32.mrf.mxu0  ;;  %v79_v14 = vpop.f32.mrf.mxu1 }
  0x89   :  { %v74_v15 = vadd.f32 %v146_v12, %v73_v13  ;;  %v80_v16 = vadd.f32 %v146_v12, %v79_v14 }
  0x8b   :  { %97 = vst [vmem:[#allocation2] sm:$0xff] %v74_v15 }
  0x8c   :  { %99 = vst [vmem:[#allocation2 + $0x10] sm:$0xff] %v80_v16  ;;  %v85_v17 = vpop.f32.mrf.mxu2  ;;  %v91_v18 = vpop.f32.mrf.mxu3 }
  0x8d   :  { %v86_v19 = vadd.f32 %v146_v12, %v85_v17  ;;  %v92_v20 = vadd.f32 %v146_v12, %v91_v18 }
  0x8f   :  { %101 = vst [vmem:[#allocation2 + $0x20] sm:$0xff] %v86_v19 }
  0x90   :  { %103 = vst [vmem:[#allocation2 + $0x30] sm:$0xff] %v92_v20  ;;  %v76_v21 = vpop.f32.mrf.mxu0  ;;  %v82_v22 = vpop.f32.mrf.mxu1 }
  0x91   :  { %v77_v23 = vadd.f32 %v146_v12, %v76_v21  ;;  %v83_v24 = vadd.f32 %v146_v12, %v82_v22 }
  0x93   :  { %98 = vst [vmem:[#allocation2 + $0x8] sm:$0xff] %v77_v23 }
  0x94   :  { %100 = vst [vmem:[#allocation2 + $0x18] sm:$0xff] %v83_v24  ;;  %v88_v25 = vpop.f32.mrf.mxu2  ;;  %v94_v26 = vpop.f32.mrf.mxu3 }
  0x95   :  { %v89_v27 = vadd.f32 %v146_v12, %v88_v25  ;;  %v95_v28 = vadd.f32 %v146_v12, %v94_v26 }
  0x97   :  { %102 = vst [vmem:[#allocation2 + $0x28] sm:$0xff] %v89_v27 }
  0x98   :  { %104 = vst [vmem:[#allocation2 + $0x38] sm:$0xff] %v95_v28 }
  0x99   :  { %117 = dma.vmem_to_hbm [thread:$0]  %s110_s10, 1024, %s112_s12, [#allocation3], %s174_s13, %s174_s13, %s175_s14  }
  0x9a   :  { %171 = dma.done.wait [#allocation3], 1024  }
  0x9b   :  { %172 = vsyncadd [#allocation3], 4294966272 }
  0x9c   :  { %122 = vsyncpa [#allocation3], 1 }

</bundles_post_ra>
